<compile_context>
chip_gen: v5e
topology: v5e:2x2
jax: 0.10.0
libtpu: 0.0.40
codegen_flags: <defaults>
</compile_context>

<pallas_src>
import jax
import jax.numpy as jnp
from jax.experimental import pallas as pl
from jax.experimental.pallas import tpu as pltpu


def _round_up(x, m):
    return (x + m - 1) // m * m


def _fused_wce_kernel(x0_ref, t0_ref, w0_ref,
                      x1_ref, t1_ref, w1_ref,
                      x2_ref, t2_ref, w2_ref,
                      out_ref):
    """One grid step = one batch element (axis 0) x one pixel tile (axis 1).

    x*_ref : (1, C_i, TILE) logits   -- classes on sublanes, pixels on lanes
    t*_ref : (1, 1,  TILE) int32     -- target class per pixel (-1 on padding)
    w*_ref : (C_i, 1) float32        -- per-class weights (resident)
    out_ref: (8, TILE) float32       -- per-N partials, resident across the
             pixel-tile axis; rows = [ls0, ws0, ls1, ws1, ls2, ws2, pad, pad]
    """

    # Initialize the per-N accumulator at the first pixel tile.
    @pl.when(pl.program_id(1) == 0)
    def _init():
        out_ref[...] = jnp.zeros_like(out_ref)

    def task(x_ref, t_ref, w_ref, row):
        x = x_ref[0].astype(jnp.float32)              # (C, TILE)
        t = t_ref[0]                                  # (1, TILE) int32
        wv = w_ref[...].astype(jnp.float32)           # (C, 1)
        c, tile = x.shape

        # Numerically stable log-sum-exp over the class (sublane) axis.
        x_max = jnp.max(x, axis=0, keepdims=True)                           # (1, TILE)
        lse = jnp.log(jnp.sum(jnp.exp(x - x_max), axis=0, keepdims=True))   # (1, TILE)

        # One-hot select of the target class (no gather).  Padded pixels have
        # t == -1, so onehot is all-zero and they contribute nothing.
        cls = jax.lax.broadcasted_iota(jnp.int32, (c, tile), 0)
        onehot = (cls == t).astype(jnp.float32)                             # (C, TILE)

        x_tgt = jnp.sum(onehot * x, axis=0, keepdims=True)                  # (1, TILE)
        w_tgt = jnp.sum(onehot * wv, axis=0, keepdims=True)                 # (1, TILE)
        nll = (x_max + lse) - x_tgt                                         # -log_softmax[target]

        out_ref[row:row + 1, :] += w_tgt * nll     # weighted-loss partial
        out_ref[row + 1:row + 2, :] += w_tgt       # weight-sum partial

    task(x0_ref, t0_ref, w0_ref, 0)
    task(x1_ref, t1_ref, w1_ref, 2)
    task(x2_ref, t2_ref, w2_ref, 4)


def multitask_wce(inputs, targets, weights, *, tile_pixels=4096):
    """Pallas equivalent of multitask_WCE.forward (num_multitask=3, reduction='mean').

    inputs : list of 3 logit arrays, each (N, C_i, H, W)
    targets: list of 3 class-index arrays, each (N, H, W)
    weights: list of 3 per-class weight vectors, each (C_i,)
    """
    assert tile_pixels % 128 == 0
    n, _, h, w = inputs[0].shape
    hw = h * w
    for x, t in zip(inputs, targets):
        assert x.shape[0] == n and x.shape[2] == h and x.shape[3] == w
        assert t.shape == (n, h, w)

    tile = min(tile_pixels, _round_up(hw, 128))
    hw_pad = _round_up(hw, tile)
    n_tiles = hw_pad // tile

    args, in_specs = [], []
    for x, t, wv in zip(inputs, targets, weights):
        c = x.shape[1]
        x2 = x.reshape(n, c, hw)                         # free NCHW view (no transpose)
        t2 = t.astype(jnp.int32).reshape(n, 1, hw)       # lane-dense targets
        if hw_pad != hw:
            x2 = jnp.pad(x2, ((0, 0), (0, 0), (0, hw_pad - hw)))
            t2 = jnp.pad(t2, ((0, 0), (0, 0), (0, hw_pad - hw)), constant_values=-1)
        wvec = jnp.asarray(wv, jnp.float32).reshape(c, 1)

        args.extend([x2, t2, wvec])
        in_specs.extend([
            pl.BlockSpec((1, c, tile), lambda i, j: (i, 0, j)),
            pl.BlockSpec((1, 1, tile), lambda i, j: (i, 0, j)),
            pl.BlockSpec((c, 1), lambda i, j: (0, 0)),
        ])

    partials = pl.pallas_call(
        _fused_wce_kernel,
        out_shape=jax.ShapeDtypeStruct((n * 8, tile), jnp.float32),
        grid=(n, n_tiles),
        in_specs=in_specs,
        out_specs=pl.BlockSpec((8, tile), lambda i, j: (i, 0)),
        compiler_params=pltpu.CompilerParams(
            dimension_semantics=("parallel", "arbitrary")),
    )(*args)

    # Tiny finalize in XLA: reduce lanes & batch, then the three divides + sum.
    sums = jnp.sum(partials.reshape(n, 8, tile), axis=(0, 2))   # (8,)
    # NOTE: division by zero (all target-class weights zero) yields NaN, matching PyTorch.
    loss_0 = sums[0] / sums[1]
    loss_1 = sums[2] / sums[3]
    loss_2 = sums[4] / sums[5]
    loss = loss_0 + loss_1 + loss_2
    return loss, loss_0, loss_1, loss_2


# ----------------- pure-JAX reference (correctness check) -----------------
def _ref_wce(logits_nchw, targets_nhw, class_weights):
    n, c, h, w = logits_nchw.shape
    x = jnp.transpose(logits_nchw, (0, 2, 3, 1)).reshape(-1, c).astype(jnp.float32)
    t = targets_nhw.reshape(-1).astype(jnp.int32)
    wvec = jnp.asarray(class_weights, jnp.float32)
    logp = jax.nn.log_softmax(x, axis=-1)
    nll = -jnp.take_along_axis(logp, t[:, None], axis=-1)[:, 0]
    wt = wvec[t]
    return jnp.sum(wt * nll) / jnp.sum(wt)


if __name__ == "__main__":
    key = jax.random.PRNGKey(0)
    N, H, W = 2, 16, 16
    num_classes = [3, 4, 5]                      # one head per task

    # deterministic class weights (as would be passed to multitask_WCE.__init__)
    weights = [1.0 + 0.25 * jnp.arange(c, dtype=jnp.float32) for c in num_classes]

    inputs, targets = [], []
    for c in num_classes:
        key, k_logit, k_tgt = jax.random.split(key, 3)
        inputs.append(jax.random.normal(k_logit, (N, c, H, W), dtype=jnp.float32))
        targets.append(jax.random.randint(k_tgt, (N, H, W), 0, c, dtype=jnp.int32))

    # small tile so the demo exercises the multi-tile accumulation path (grid = (2, 2))
    loss, l0, l1, l2 = multitask_wce(inputs, targets, weights, tile_pixels=128)
    jax.block_until_ready((loss, l0, l1, l2))

    # sanity check against pure-JAX reference
    r0 = _ref_wce(inputs[0], targets[0], weights[0])
    r1 = _ref_wce(inputs[1], targets[1], weights[1])
    r2 = _ref_wce(inputs[2], targets[2], weights[2])
    rloss = r0 + r1 + r2
    assert jnp.allclose(l0, r0, atol=1e-5, rtol=1e-5), (l0, r0)
    assert jnp.allclose(l1, r1, atol=1e-5, rtol=1e-5), (l1, r1)
    assert jnp.allclose(l2, r2, atol=1e-5, rtol=1e-5), (l2, r2)
    assert jnp.allclose(loss, rloss, atol=1e-5, rtol=1e-5), (loss, rloss)

    print("KERNEL_OK")
</pallas_src>

<mosaic_0001>
module attributes {stable_mosaic.version = 11 : i64} {
  func.func @_fused_wce_kernel(%arg0: i32, %arg1: i32, %arg2: memref<1x3x128xf32, #tpu.memory_space<vmem>>, %arg3: memref<1x1x128xi32, #tpu.memory_space<vmem>>, %arg4: memref<3x1xf32, #tpu.memory_space<vmem>>, %arg5: memref<1x4x128xf32, #tpu.memory_space<vmem>>, %arg6: memref<1x1x128xi32, #tpu.memory_space<vmem>>, %arg7: memref<4x1xf32, #tpu.memory_space<vmem>>, %arg8: memref<1x5x128xf32, #tpu.memory_space<vmem>>, %arg9: memref<1x1x128xi32, #tpu.memory_space<vmem>>, %arg10: memref<5x1xf32, #tpu.memory_space<vmem>>, %arg11: memref<8x128xf32, #tpu.memory_space<vmem>>) attributes {dimension_semantics = [#tpu.dimension_semantics<parallel>, #tpu.dimension_semantics<arbitrary>], iteration_bounds = array<i64: 2, 2>, scalar_prefetch = 0 : i64, scratch_operands = 0 : i64, tpu.core_type = #tpu.core_type<tc>, window_params = [{transform_indices = @transform_0, window_bounds = array<i64: 1, 3, 128>}, {transform_indices = @transform_1, window_bounds = array<i64: 1, 1, 128>}, {pipeline_mode = #tpu.pipeline_mode<synchronous>, transform_indices = @transform_2, window_bounds = array<i64: 3, 1>}, {transform_indices = @transform_3, window_bounds = array<i64: 1, 4, 128>}, {transform_indices = @transform_4, window_bounds = array<i64: 1, 1, 128>}, {pipeline_mode = #tpu.pipeline_mode<synchronous>, transform_indices = @transform_5, window_bounds = array<i64: 4, 1>}, {transform_indices = @transform_6, window_bounds = array<i64: 1, 5, 128>}, {transform_indices = @transform_7, window_bounds = array<i64: 1, 1, 128>}, {pipeline_mode = #tpu.pipeline_mode<synchronous>, transform_indices = @transform_8, window_bounds = array<i64: 5, 1>}, {transform_indices = @transform_9, window_bounds = array<i64: 8, 128>}]} {
    %c0_i32 = arith.constant 0 : i32
    %0 = arith.cmpi eq, %arg1, %c0_i32 : i32
    %1 = arith.extui %0 : i1 to i32
    %c0_i32_0 = arith.constant 0 : i32
    %2 = arith.cmpi ne, %1, %c0_i32_0 : i32
    scf.if %2 {
      %cst_54 = arith.constant 0.000000e+00 : f32
      %105 = vector.broadcast %cst_54 : f32 to vector<8x128xf32>
      %c0_55 = arith.constant 0 : index
      %c0_56 = arith.constant 0 : index
      %106 = vector.load %arg11[%c0_55, %c0_56] : memref<8x128xf32, #tpu.memory_space<vmem>>, vector<8x128xf32>
      tpu.vector_store %arg11[%c0_55, %c0_56], %105 {strides = array<i32>} : memref<8x128xf32, #tpu.memory_space<vmem>>, vector<8x128xf32>,
    } else {
    }
    %c0 = arith.constant 0 : index
    %c0_1 = arith.constant 0 : index
    %c0_2 = arith.constant 0 : index
    %3 = vector.load %arg2[%c0, %c0_1, %c0_2] : memref<1x3x128xf32, #tpu.memory_space<vmem>>, vector<1x3x128xf32>
    %4 = vector.shape_cast %3 : vector<1x3x128xf32> to vector<3x128xf32>
    %c0_3 = arith.constant 0 : index
    %c0_4 = arith.constant 0 : index
    %c0_5 = arith.constant 0 : index
    %5 = vector.load %arg3[%c0_3, %c0_4, %c0_5] : memref<1x1x128xi32, #tpu.memory_space<vmem>>, vector<1x1x128xi32>
    %6 = vector.shape_cast %5 : vector<1x1x128xi32> to vector<1x128xi32>
    %c0_6 = arith.constant 0 : index
    %c0_7 = arith.constant 0 : index
    %7 = vector.load %arg4[%c0_6, %c0_7] : memref<3x1xf32, #tpu.memory_space<vmem>>, vector<3x1xf32>
    %cst = arith.constant dense<0xFF800000> : vector<128xf32>
    %8 = vector.multi_reduction <maximumf>, %4, %cst [0] : vector<3x128xf32> to vector<128xf32>
    %9 = vector.shape_cast %8 : vector<128xf32> to vector<1x128xf32>
    %10 = vector.broadcast %9 : vector<1x128xf32> to vector<3x128xf32>
    %11 = arith.subf %4, %10 : vector<3x128xf32>
    %12 = math.exp %11 : vector<3x128xf32>
    %cst_8 = arith.constant dense<0.000000e+00> : vector<128xf32>
    %13 = vector.multi_reduction <add>, %12, %cst_8 [0] : vector<3x128xf32> to vector<128xf32>
    %14 = vector.shape_cast %13 : vector<128xf32> to vector<1x128xf32>
    %15 = math.log %14 : vector<1x128xf32>
    %16 = tpu.iota {dimensions = array<i32: 0>} : vector<3x128xi32>
    %17 = vector.broadcast %6 : vector<1x128xi32> to vector<3x128xi32>
    %18 = arith.cmpi eq, %16, %17 : vector<3x128xi32>
    %19 = arith.extui %18 : vector<3x128xi1> to vector<3x128xi32>
    %20 = arith.sitofp %19 : vector<3x128xi32> to vector<3x128xf32>
    %21 = arith.mulf %20, %4 : vector<3x128xf32>
    %cst_9 = arith.constant dense<0.000000e+00> : vector<128xf32>
    %22 = vector.multi_reduction <add>, %21, %cst_9 [0] : vector<3x128xf32> to vector<128xf32>
    %23 = vector.shape_cast %22 : vector<128xf32> to vector<1x128xf32>
    %24 = vector.broadcast %7 : vector<3x1xf32> to vector<3x128xf32>
    %25 = arith.mulf %20, %24 : vector<3x128xf32>
    %cst_10 = arith.constant dense<0.000000e+00> : vector<128xf32>
    %26 = vector.multi_reduction <add>, %25, %cst_10 [0] : vector<3x128xf32> to vector<128xf32>
    %27 = vector.shape_cast %26 : vector<128xf32> to vector<1x128xf32>
    %28 = arith.addf %9, %15 : vector<1x128xf32>
    %29 = arith.subf %28, %23 : vector<1x128xf32>
    %c0_11 = arith.constant 0 : index
    %c0_12 = arith.constant 0 : index
    %30 = vector.load %arg11[%c0_11, %c0_12] : memref<8x128xf32, #tpu.memory_space<vmem>>, vector<1x128xf32>
    %31 = arith.mulf %27, %29 : vector<1x128xf32>
    %32 = arith.addf %30, %31 : vector<1x128xf32>
    %c0_13 = arith.constant 0 : index
    %c0_14 = arith.constant 0 : index
    %33 = vector.load %arg11[%c0_13, %c0_14] : memref<8x128xf32, #tpu.memory_space<vmem>>, vector<1x128xf32>
    tpu.vector_store %arg11[%c0_13, %c0_14], %32 {strides = array<i32>} : memref<8x128xf32, #tpu.memory_space<vmem>>, vector<1x128xf32>,
    %c1 = arith.constant 1 : index
    %c0_15 = arith.constant 0 : index
    %34 = vector.load %arg11[%c1, %c0_15] : memref<8x128xf32, #tpu.memory_space<vmem>>, vector<1x128xf32>
    %35 = arith.addf %34, %27 : vector<1x128xf32>
    %c1_16 = arith.constant 1 : index
    %c0_17 = arith.constant 0 : index
    %36 = vector.load %arg11[%c1_16, %c0_17] : memref<8x128xf32, #tpu.memory_space<vmem>>, vector<1x128xf32>
    tpu.vector_store %arg11[%c1_16, %c0_17], %35 {strides = array<i32>} : memref<8x128xf32, #tpu.memory_space<vmem>>, vector<1x128xf32>,
    %c0_18 = arith.constant 0 : index
    %c0_19 = arith.constant 0 : index
    %c0_20 = arith.constant 0 : index
    %37 = vector.load %arg5[%c0_18, %c0_19, %c0_20] : memref<1x4x128xf32, #tpu.memory_space<vmem>>, vector<1x4x128xf32>
    %38 = vector.shape_cast %37 : vector<1x4x128xf32> to vector<4x128xf32>
    %c0_21 = arith.constant 0 : index
    %c0_22 = arith.constant 0 : index
    %c0_23 = arith.constant 0 : index
    %39 = vector.load %arg6[%c0_21, %c0_22, %c0_23] : memref<1x1x128xi32, #tpu.memory_space<vmem>>, vector<1x1x128xi32>
    %40 = vector.shape_cast %39 : vector<1x1x128xi32> to vector<1x128xi32>
    %c0_24 = arith.constant 0 : index
    %c0_25 = arith.constant 0 : index
    %41 = vector.load %arg7[%c0_24, %c0_25] : memref<4x1xf32, #tpu.memory_space<vmem>>, vector<4x1xf32>
    %cst_26 = arith.constant dense<0xFF800000> : vector<128xf32>
    %42 = vector.multi_reduction <maximumf>, %38, %cst_26 [0] : vector<4x128xf32> to vector<128xf32>
    %43 = vector.shape_cast %42 : vector<128xf32> to vector<1x128xf32>
    %44 = vector.broadcast %43 : vector<1x128xf32> to vector<4x128xf32>
    %45 = arith.subf %38, %44 : vector<4x128xf32>
    %46 = math.exp %45 : vector<4x128xf32>
    %cst_27 = arith.constant dense<0.000000e+00> : vector<128xf32>
    %47 = vector.multi_reduction <add>, %46, %cst_27 [0] : vector<4x128xf32> to vector<128xf32>
    %48 = vector.shape_cast %47 : vector<128xf32> to vector<1x128xf32>
    %49 = math.log %48 : vector<1x128xf32>
    %50 = tpu.iota {dimensions = array<i32: 0>} : vector<4x128xi32>
    %51 = vector.broadcast %40 : vector<1x128xi32> to vector<4x128xi32>
    %52 = arith.cmpi eq, %50, %51 : vector<4x128xi32>
    %53 = arith.extui %52 : vector<4x128xi1> to vector<4x128xi32>
    %54 = arith.sitofp %53 : vector<4x128xi32> to vector<4x128xf32>
    %55 = arith.mulf %54, %38 : vector<4x128xf32>
    %cst_28 = arith.constant dense<0.000000e+00> : vector<128xf32>
    %56 = vector.multi_reduction <add>, %55, %cst_28 [0] : vector<4x128xf32> to vector<128xf32>
    %57 = vector.shape_cast %56 : vector<128xf32> to vector<1x128xf32>
    %58 = vector.broadcast %41 : vector<4x1xf32> to vector<4x128xf32>
    %59 = arith.mulf %54, %58 : vector<4x128xf32>
    %cst_29 = arith.constant dense<0.000000e+00> : vector<128xf32>
    %60 = vector.multi_reduction <add>, %59, %cst_29 [0] : vector<4x128xf32> to vector<128xf32>
    %61 = vector.shape_cast %60 : vector<128xf32> to vector<1x128xf32>
    %62 = arith.addf %43, %49 : vector<1x128xf32>
    %63 = arith.subf %62, %57 : vector<1x128xf32>
    %c2 = arith.constant 2 : index
    %c0_30 = arith.constant 0 : index
    %64 = vector.load %arg11[%c2, %c0_30] : memref<8x128xf32, #tpu.memory_space<vmem>>, vector<1x128xf32>
    %65 = arith.mulf %61, %63 : vector<1x128xf32>
    %66 = arith.addf %64, %65 : vector<1x128xf32>
    %c2_31 = arith.constant 2 : index
    %c0_32 = arith.constant 0 : index
    %67 = vector.load %arg11[%c2_31, %c0_32] : memref<8x128xf32, #tpu.memory_space<vmem>>, vector<1x128xf32>
    tpu.vector_store %arg11[%c2_31, %c0_32], %66 {strides = array<i32>} : memref<8x128xf32, #tpu.memory_space<vmem>>, vector<1x128xf32>,
    %c3 = arith.constant 3 : index
    %c0_33 = arith.constant 0 : index
    %68 = vector.load %arg11[%c3, %c0_33] : memref<8x128xf32, #tpu.memory_space<vmem>>, vector<1x128xf32>
    %69 = arith.addf %68, %61 : vector<1x128xf32>
    %c3_34 = arith.constant 3 : index
    %c0_35 = arith.constant 0 : index
    %70 = vector.load %arg11[%c3_34, %c0_35] : memref<8x128xf32, #tpu.memory_space<vmem>>, vector<1x128xf32>
    tpu.vector_store %arg11[%c3_34, %c0_35], %69 {strides = array<i32>} : memref<8x128xf32, #tpu.memory_space<vmem>>, vector<1x128xf32>,
    %c0_36 = arith.constant 0 : index
    %c0_37 = arith.constant 0 : index
    %c0_38 = arith.constant 0 : index
    %71 = vector.load %arg8[%c0_36, %c0_37, %c0_38] : memref<1x5x128xf32, #tpu.memory_space<vmem>>, vector<1x5x128xf32>
    %72 = vector.shape_cast %71 : vector<1x5x128xf32> to vector<5x128xf32>
    %c0_39 = arith.constant 0 : index
    %c0_40 = arith.constant 0 : index
    %c0_41 = arith.constant 0 : index
    %73 = vector.load %arg9[%c0_39, %c0_40, %c0_41] : memref<1x1x128xi32, #tpu.memory_space<vmem>>, vector<1x1x128xi32>
    %74 = vector.shape_cast %73 : vector<1x1x128xi32> to vector<1x128xi32>
    %c0_42 = arith.constant 0 : index
    %c0_43 = arith.constant 0 : index
    %75 = vector.load %arg10[%c0_42, %c0_43] : memref<5x1xf32, #tpu.memory_space<vmem>>, vector<5x1xf32>
    %cst_44 = arith.constant dense<0xFF800000> : vector<128xf32>
    %76 = vector.multi_reduction <maximumf>, %72, %cst_44 [0] : vector<5x128xf32> to vector<128xf32>
    %77 = vector.shape_cast %76 : vector<128xf32> to vector<1x128xf32>
    %78 = vector.broadcast %77 : vector<1x128xf32> to vector<5x128xf32>
    %79 = arith.subf %72, %78 : vector<5x128xf32>
    %80 = math.exp %79 : vector<5x128xf32>
    %cst_45 = arith.constant dense<0.000000e+00> : vector<128xf32>
    %81 = vector.multi_reduction <add>, %80, %cst_45 [0] : vector<5x128xf32> to vector<128xf32>
    %82 = vector.shape_cast %81 : vector<128xf32> to vector<1x128xf32>
    %83 = math.log %82 : vector<1x128xf32>
    %84 = tpu.iota {dimensions = array<i32: 0>} : vector<5x128xi32>
    %85 = vector.broadcast %74 : vector<1x128xi32> to vector<5x128xi32>
    %86 = arith.cmpi eq, %84, %85 : vector<5x128xi32>
    %87 = arith.extui %86 : vector<5x128xi1> to vector<5x128xi32>
    %88 = arith.sitofp %87 : vector<5x128xi32> to vector<5x128xf32>
    %89 = arith.mulf %88, %72 : vector<5x128xf32>
    %cst_46 = arith.constant dense<0.000000e+00> : vector<128xf32>
    %90 = vector.multi_reduction <add>, %89, %cst_46 [0] : vector<5x128xf32> to vector<128xf32>
    %91 = vector.shape_cast %90 : vector<128xf32> to vector<1x128xf32>
    %92 = vector.broadcast %75 : vector<5x1xf32> to vector<5x128xf32>
    %93 = arith.mulf %88, %92 : vector<5x128xf32>
    %cst_47 = arith.constant dense<0.000000e+00> : vector<128xf32>
    %94 = vector.multi_reduction <add>, %93, %cst_47 [0] : vector<5x128xf32> to vector<128xf32>
    %95 = vector.shape_cast %94 : vector<128xf32> to vector<1x128xf32>
    %96 = arith.addf %77, %83 : vector<1x128xf32>
    %97 = arith.subf %96, %91 : vector<1x128xf32>
    %c4 = arith.constant 4 : index
    %c0_48 = arith.constant 0 : index
    %98 = vector.load %arg11[%c4, %c0_48] : memref<8x128xf32, #tpu.memory_space<vmem>>, vector<1x128xf32>
    %99 = arith.mulf %95, %97 : vector<1x128xf32>
    %100 = arith.addf %98, %99 : vector<1x128xf32>
    %c4_49 = arith.constant 4 : index
    %c0_50 = arith.constant 0 : index
    %101 = vector.load %arg11[%c4_49, %c0_50] : memref<8x128xf32, #tpu.memory_space<vmem>>, vector<1x128xf32>
    tpu.vector_store %arg11[%c4_49, %c0_50], %100 {strides = array<i32>} : memref<8x128xf32, #tpu.memory_space<vmem>>, vector<1x128xf32>,
    %c5 = arith.constant 5 : index
    %c0_51 = arith.constant 0 : index
    %102 = vector.load %arg11[%c5, %c0_51] : memref<8x128xf32, #tpu.memory_space<vmem>>, vector<1x128xf32>
    %103 = arith.addf %102, %95 : vector<1x128xf32>
    %c5_52 = arith.constant 5 : index
    %c0_53 = arith.constant 0 : index
    %104 = vector.load %arg11[%c5_52, %c0_53] : memref<8x128xf32, #tpu.memory_space<vmem>>, vector<1x128xf32>
    tpu.vector_store %arg11[%c5_52, %c0_53], %103 {strides = array<i32>} : memref<8x128xf32, #tpu.memory_space<vmem>>, vector<1x128xf32>,
    return
  }
  func.func @transform_0(%arg0: i32, %arg1: i32) -> (i32, i32, i32) {
    %c0_i32 = arith.constant 0 : i32
    %c0_i32_0 = arith.constant 0 : i32
    return %arg0, %c0_i32, %arg1 : i32, i32, i32
  }
  func.func @transform_1(%arg0: i32, %arg1: i32) -> (i32, i32, i32) {
    %c0_i32 = arith.constant 0 : i32
    %c0_i32_0 = arith.constant 0 : i32
    return %arg0, %c0_i32, %arg1 : i32, i32, i32
  }
  func.func @transform_2(%arg0: i32, %arg1: i32) -> (i32, i32) {
    %c0_i32 = arith.constant 0 : i32
    %c0_i32_0 = arith.constant 0 : i32
    %c0_i32_1 = arith.constant 0 : i32
    return %c0_i32, %c0_i32_0 : i32, i32
  }
  func.func @transform_3(%arg0: i32, %arg1: i32) -> (i32, i32, i32) {
    %c0_i32 = arith.constant 0 : i32
    %c0_i32_0 = arith.constant 0 : i32
    return %arg0, %c0_i32, %arg1 : i32, i32, i32
  }
  func.func @transform_4(%arg0: i32, %arg1: i32) -> (i32, i32, i32) {
    %c0_i32 = arith.constant 0 : i32
    %c0_i32_0 = arith.constant 0 : i32
    return %arg0, %c0_i32, %arg1 : i32, i32, i32
  }
  func.func @transform_5(%arg0: i32, %arg1: i32) -> (i32, i32) {
    %c0_i32 = arith.constant 0 : i32
    %c0_i32_0 = arith.constant 0 : i32
    %c0_i32_1 = arith.constant 0 : i32
    return %c0_i32, %c0_i32_0 : i32, i32
  }
  func.func @transform_6(%arg0: i32, %arg1: i32) -> (i32, i32, i32) {
    %c0_i32 = arith.constant 0 : i32
    %c0_i32_0 = arith.constant 0 : i32
    return %arg0, %c0_i32, %arg1 : i32, i32, i32
  }
  func.func @transform_7(%arg0: i32, %arg1: i32) -> (i32, i32, i32) {
    %c0_i32 = arith.constant 0 : i32
    %c0_i32_0 = arith.constant 0 : i32
    return %arg0, %c0_i32, %arg1 : i32, i32, i32
  }
  func.func @transform_8(%arg0: i32, %arg1: i32) -> (i32, i32) {
    %c0_i32 = arith.constant 0 : i32
    %c0_i32_0 = arith.constant 0 : i32
    %c0_i32_1 = arith.constant 0 : i32
    return %c0_i32, %c0_i32_0 : i32, i32
  }
  func.func @transform_9(%arg0: i32, %arg1: i32) -> (i32, i32) {
    %c0_i32 = arith.constant 0 : i32
    %c0_i32_0 = arith.constant 0 : i32
    return %arg0, %c0_i32 : i32, i32
  }
}

</mosaic_0001>

<bundles_post_ra>
// kernel: tpu_custom_call.1
= control target key start
LH: loop header
LB: loop body
LE: loop exit
PB: predicated region body
PF: predicated region fallthrough
CT: control target
= control target key end

     0   :  { %s1327_s0 = inlined_call_operand.vmem [shape: f32[2,3,256], index: 0, kind: input, shape index: {}]   ;;  %s1328_s1 = inlined_call_operand.vmem [shape: s32[2,1,256], index: 1, kind: input, shape index: {}]   ;;  %s1329_s2 = inlined_call_operand.vmem [shape: f32[3,1], index: 2, kind: input, shape index: {}]   ;;  %s1330_s3 = inlined_call_operand.vmem [shape: f32[2,4,256], index: 3, kind: input, shape index: {}]   ;;  %s1331_s4 = inlined_call_operand.vmem [shape: s32[2,1,256], index: 4, kind: input, shape index: {}]   ;;  %s1332_s5 = inlined_call_operand.vmem [shape: f32[4,1], index: 5, kind: input, shape index: {}]   ;;  %s1333_s6 = inlined_call_operand.vmem [shape: f32[2,5,256], index: 6, kind: input, shape index: {}]   ;;  %s1334_s7 = inlined_call_operand.vmem [shape: s32[2,1,256], index: 7, kind: input, shape index: {}]   ;;  %s1335_s8 = inlined_call_operand.vmem [shape: f32[5,1], index: 8, kind: input, shape index: {}]   ;;  %s1336_s9 = inlined_call_operand.hbm [shape: f32[16,128], index: 9, kind: output, shape index: {}]  }
   0x1   :  { %1349 = sst [smem:[#allocation15_spill]] %s1336_s9 }
   0x2   :  { %14 = vsyncpa [#allocation3], 0 }
   0x3   :  { %16 = vsyncpa [#allocation3 + $0x1], 0  ;;  %s1114_s30 = smov 0   ;;  %s1116_s10 = smov 0  }
   0x4   :  { %s1118_s11 = smov 0   ;;  %s1120_s12 = smov 0  }
   0x5   :  { %s1122_s13 = smov 0   ;;  %s1124_s14 = smov 0  }
   0x6   :  { %s1126_s15 = smov 0   ;;  %s1128_s16 = smov 0  }
   0x7 LB: > { %1350 = sst [smem:[#allocation5_spill]] %s1031_s30  ;;  %s851_s17 = sadd.s32 4294967295, %s1059_s16   ;;  %s1059_s16 = sphi %s1128_s16, %s22_s16   ;;  %s1055_s15 = sphi %s1126_s15, %s1374_s15   ;;  %s1051_s14 = sphi %s1124_s14, %s1373_s14   ;;  %s1047_s13 = sphi %s1122_s13, %s1372_s13   ;;  %s1043_s12 = sphi %s1120_s12, %s1371_s12   ;;  %s1039_s11 = sphi %s1118_s11, %s1370_s11   ;;  %s1035_s10 = sphi %s1116_s10, %s1376_s10   ;;  %s1031_s30 = sphi %s1114_s30, %s1375_s30  }
   0x8   : > { %1351 = sst [smem:[#allocation6_spill]] %s1039_s11  ;;  %s852_s18 = sadd.s32 4294967294, %s1059_s16  }
   0x9   : > { %1352 = sst [smem:[#allocation7_spill]] %s1051_s14  ;;  %s31_s19 = sadd.s32 1, %s1051_s14 }
   0xa   : > { %1353 = sst [smem:[#allocation8_spill]] %s1055_s15  ;;  %p32_p0 = scmp.ge.s32.totalorder %s31_s19, 2 }
   0xb   : > { %1354 = sst [smem:[#allocation9_spill]] %s1059_s16  ;;  %s34_s20 = sadd.s32 1, %s1055_s15 }
   0xc   : > { %p282_p1 = scmp.ne.s32.totalorder %s1039_s11, %s1035_s10  ;;  %p283_p2 = scmp.eq.s32.totalorder %s851_s17, 3 }
   0xd   : > { %s1378_s19 = smov (%p32_p0, %s31_s19), 0  ;;  %s1380_s20 = smov (!%p32_p0, %s34_s20), %s1055_s15 }
   0xe   : > { %1355 = sst [smem:[#allocation10_spill]] %s1378_s19  ;;  %p1163_p3 = por %p283_p2, %p282_p1 }
   0xf   : > { %p288_p4 = scmp.ne.s32.totalorder %s1035_s10, %s1031_s30  ;;  %p36_p5 = scmp.ge.s32.totalorder %s1380_s20, 2 }
  0x10   : > { %s1356_s21 = scalar_select %p1163_p3, 1, 0 }
  0x11   : > { %p289_p6 = scmp.eq.s32.totalorder %s852_s18, 3  ;;  %p855_p7 = scmp.ge.s32.totalorder %s1059_s16, 1 }
  0x12   : > { %1357 = sst [smem:[#allocation11_spill]] %s1356_s21  ;;  %p379_p8 = scmp.lt.s32.totalorder %s1059_s16, 5 }
  0x13   : > { %s1382_s20 = smov (%p36_p5, %s1380_s20), 0  ;;  %p1173_p9 = por %p289_p6, %p288_p4 }
  0x14   : > { %1358 = sst [smem:[#allocation12_spill]] %s1382_s20  ;;  %p380_p10 = pnand %p855_p7, %p379_p8 }
  0x15   : > { %s1359_s22 = scalar_select %p1173_p9, 1, 0 }
  0x16   : > { %s269_s23 = ssub.s32 %s1055_s15, %s1382_s20  ;;  %s272_s24 = sadd.s32 1, %s1039_s11 }
  0x17   : > { %1360 = sst [smem:[#allocation13_spill]] %s1359_s22  ;;  %p270_p11 = scmp.eq.s32.totalorder %s269_s23, 0 }
  0x18   : > { %383 = sbr.rel (%p380_p10) target bundleno = 187 (0xbb), region = 56  ;;  %s1340_s26 = sand.u32 (!%p380_p10), 1, %s1035_s10  }
  0x19   : > { %s1181_s25 = scalar_select %p270_p11, %s1039_s11, %s272_s24  }
  0x1a   : > { %p455_p12 = scmp.lt.s32.totalorder (!%p380_p10), %s1047_s13, 1  ;;  %s856_s27 = sshll.u32 (!%p380_p10), %s1340_s26, 3 }
  0x1b   : > { %1361 = sst [smem:[#allocation14_spill]] %s1181_s25  ;;  %p457_p13 = scmp.lt.s32.totalorder (!%p380_p10), %s1043_s12, 1 }
  0x1c   : > { %s1217_s14 = scalar_lea.vmem (!%p380_p10), [#allocation2], %s856_s27  ;;  %p866_p0 = scmp.ne.s32.totalorder (!%p380_p10), %s1043_s12, 0 }
  0x1d   : > { %s456_s28 = scalar_select %p455_p12, %s1047_s13, 1 }
  0x1e   : > { %s458_s29 = scalar_select %p457_p13, %s1043_s12, 1 }
  0x1f   : > { %s857_s17 = sshll.u32 %s456_s28, 1 }
  0x20   : > { %s1190_s18 = sadd.s32 %s857_s17, %s458_s29  ;;  %503 = sbr.rel (%p866_p0) target bundleno = 39 (0x27), region = 60 }
  0x21   : > { %s858_s23 = sshll.u32 %s1190_s18, 2  ;;  %s484_s22 = scalar_lea.vmem %s1331_s4, %s1190_s18 }
  0x22   : > { %s462_s26 = scalar_lea.vmem %s1327_s0, %s858_s23  ;;  %s1203_s28 = scalar_lea.vmem %s1330_s3, %s858_s23 }
  0x23   : > { %s864_s30 = sshll.u32 %s1190_s18, 3  ;;  %s499_s19 = scalar_lea.vmem %s1334_s7, %s1190_s18 }
  0x24   : > { %s492_s9 = scalar_lea.vmem %s1333_s6, %s864_s30 }
  0x25   : > { %v1061_v0 = vmov 0.0  }
  0x26   : > { %504 = vst [vmem:[%s1217_s14] sm:$0xff] %v1061_v0 }
  0x27 PF: > { %v507_v1 = vld [vmem:[%s1329_s2] sm:$0x7]  ;;  %v1062_v3 = vmov 0   ;;  %vm508_vm0 = vcmask 1042432   ;;  %vm624_vm1 = vcmask 1044480   ;;  %vm567_vm2 = vcmask 1043456  }
  0x28   : > { %v623_v2 = vld [vmem:[%s1335_s8] sm:$0x1f]  ;;  %948 = vset.pattern.permute.xlu0 %v1062_v3  ;;  %949 = vset.pattern.permute.xlu1 %v1062_v3  ;;  %v528_v37 = vlaneseq  ;;  %v1063_v49 = vmov 0.0   ;;  %s1363_s17 = sld [smem:[#allocation15_spill]]  ;;  %s691_s11 = sshll.u32 %s1217_s14, 4  ;;  %s692_s11 = int_to_ptr.vmem [resolvable:$true] %s691_s11 }
  0x29   : > { %544 = vperm.xlu0 %948, %v507_v1   ;;  %658 = vperm.xlu1 %949, %v623_v2   ;;  %v566_v4 = vld [vmem:[%s1332_s5] sm:$0xf] }
  0x2a   : > { %v505_v5 = vld [vmem:[%s462_s26] sm:$0x7]  ;;  %v529_v41 = vshrl.u32 %v528_v37, 7  ;;  %s1362_s26 = scalar_lea.vmem %s1328_s1, %s1190_s18 }
  0x2b   : > { %v509_v6 = vsel %vm508_vm0, %v505_v5, -inf  ;;  %v621_v8 = vld [vmem:[%s492_s9] sm:$0x1f] }
  0x2c   : > { %v510_v7 = vrot.slane %v509_v6, 4  ;;  %v625_v9 = vsel %vm624_vm1, %v621_v8, -inf  ;;  %v564_v16 = vld [vmem:[%s1203_s28] sm:$0xf] }
  0x2d   : > { %v626_v11 = vrot.slane %v625_v9, 4  ;;  %v568_v17 = vsel %vm567_vm2, %v564_v16, -inf  ;;  %v950_v42 = vld [vmem:[%s1362_s26] ss:$0 sm:$0xff] }
  0x2e   : > { %v511_v10 = vmax.f32 %v509_v6, %v510_v7  ;;  %v569_v20 = vrot.slane %v568_v17, 4  ;;  %v951_v44 = vld [vmem:[%s499_s19] ss:$0 sm:$0xff]  ;;  %vm531_vm3 = vcmp.eq.s32.totalorder %v529_v41, %v950_v42  ;;  %s871_s19 = sshll.u32 %s1047_s13, 3  ;;  %s1365_s13 = sand.u32 1, %s1035_s10  }
  0x2f   : > { %v627_v13 = vmax.f32 %v625_v9, %v626_v11  ;;  %vm645_vm4 = vcmp.eq.s32.totalorder %v529_v41, %v951_v44  ;;  %v867_v50 = vsel %vm531_vm3, 1.0, %v1063_v49  ;;  %v952_v56 = vld [vmem:[%s484_s22] ss:$0 sm:$0xff]  ;;  %s689_s20 = scalar_lea.hbm %s1363_s17, %s871_s19  ;;  %s679_s25 = scalar_lea.sflag [#allocation3], %s1365_s13 }
  0x30   : > { %v512_v12 = vrot.slane %v511_v10, 2  ;;  %v570_v23 = vmax.f32 %v568_v17, %v569_v20  ;;  %v869_v53 = vsel %vm645_vm4, 1.0, %v1063_v49  ;;  %v534_v54 = vmul.f32 %v867_v50, %v505_v5  ;;  %s693_s15 = sshll.u32 %s689_s20, 4  ;;  %s985_s21 = scalar_lea.hbm %s1363_s17, 16  ;;  %s694_s15 = int_to_ptr.hbm [resolvable:$true] %s693_s15 }
  0x31   : > { %601 = vperm.xlu0 %948, %v566_v4   ;;  %v628_v15 = vrot.slane %v627_v13, 2  ;;  %v648_v58 = vmul.f32 %v869_v53, %v621_v8  ;;  %vm588_vm5 = vcmp.eq.s32.totalorder %v529_v41, %v952_v56  ;;  %s979_s16 = sshra.s32 %s694_s15, 4  ;;  %s980_s16 = int_to_ptr.hbm [resolvable:$true] %s979_s16 }
  0x32   : > { %v513_v14 = vmax.f32 %v511_v10, %v512_v12  ;;  %v571_v25 = vrot.slane %v570_v23, 2  ;;  %v535_v60 = vsel %vm508_vm0, %v534_v54, 0.0  ;;  %v868_v2 = vsel %vm588_vm5, 1.0, %v1063_v49  ;;  %v561_v54 = vld [vmem:[%s1217_s14 + $0x1] sm:$0x1]  ;;  %s981_s30 = scalar_lea.hbm %s980_s16, 8  ;;  %p986_p5 = scmp.lt.s32.totalorder %s980_s16, %s1363_s17 }
  0x33   : > { %v629_v19 = vmax.f32 %v627_v13, %v628_v15  ;;  %v649_v63 = vsel %vm624_vm1, %v648_v58, 0.0  ;;  %v536_v1 = vrot.slane %v535_v60, 4  ;;  %v591_v7 = vmul.f32 %v868_v2, %v564_v16  ;;  %p982_p1 = scmp.ne.s32.totalorder %s980_s16, %s981_s30  ;;  %p987_p6 = scmp.lt.s32.totalorder %s985_s21, %s981_s30 }
  0x34   : > { %v514_v18 = vrot.slane %v513_v14, 1  ;;  %v572_v27 = vmax.f32 %v570_v23, %v571_v25  ;;  %v650_v3 = vrot.slane %v649_v63, 4 }
  0x35   : > { %v630_v22 = vrot.slane %v629_v19, 1  ;;  %v537_v9 = vadd.f32 %v536_v1, %v535_v60  ;;  %p983_p2 = pnand %p982_p1, %p1163_p3  ;;  %p988_p7 = por %p987_p6, %p986_p5 }
  0x36   : > { %v1234_v21 = vmax.f32 %v513_v14, %v514_v18  ;;  %v573_v29 = vrot.slane %v572_v27, 1  ;;  %v651_v10 = vadd.f32 %v650_v3, %v649_v63  ;;  %v557_v63 = vld [vmem:[%s1217_s14] sm:$0x1] }
  0x37   : > { %v1236_v24 = vmax.f32 %v629_v19, %v630_v22  ;;  %v538_v12 = vrot.slane %v537_v9, 2  ;;  %p984_p4 = pneg %p983_p2 }
  0x38   : > { %v516_v26 = vsub.f32 %v505_v5, %v1234_v21  ;;  %v1240_v32 = vmax.f32 %v572_v27, %v573_v29  ;;  %v652_v13 = vrot.slane %v651_v10, 2 }
  0x39   : > { %v632_v28 = vsub.f32 %v621_v8, %v1236_v24  ;;  %v592_v8 = vsel %vm567_vm2, %v591_v7, 0.0  ;;  %v539_v18 = vadd.f32 %v538_v12, %v537_v9  ;;  %p989_p8 = pnand %p988_p7, %p984_p4 }
  0x3a   : > { %v517_v30 = vmul.f32 1.442695, %v516_v26  ;;  %v575_v33 = vsub.f32 %v564_v16, %v1240_v32  ;;  %v593_v15 = vrot.slane %v592_v8, 4  ;;  %v653_v23 = vadd.f32 %v652_v13, %v651_v10 }
  0x3b   : > { %v633_v31 = vmul.f32 1.442695, %v632_v28  ;;  %v540_v29 = vrot.slane %v539_v18, 1 }
  0x3c   : > { %953 = vpow2.f32 %v517_v30  ;;  %v576_v36 = vmul.f32 1.442695, %v575_v33  ;;  %v594_v27 = vadd.f32 %v593_v15, %v592_v8 }
  0x3d   : > { %955 = vpow2.f32 %v633_v31 }
  0x3e   : > { %957 = vpow2.f32 %v576_v36  ;;  %v595_v37 = vrot.slane %v594_v27, 2 }
  0x42   : > { %v954_v34 = vpop.eup %953 }
  0x43   : > { %v956_v35 = vpop.eup %955  ;;  %v519_v38 = vsel %vm508_vm0, %v954_v34, 0.0 }
  0x44   : > { %v635_v39 = vsel %vm624_vm1, %v956_v35, 0.0  ;;  %v520_v40 = vrot.slane %v519_v38, 4  ;;  %v958_v46 = vpop.eup %957  ;;  %v654_v35 = vrot.slane %v653_v23, 1 }
  0x45   : > { %v636_v43 = vrot.slane %v635_v39, 4  ;;  %v578_v51 = vsel %vm567_vm2, %v958_v46, 0.0 }
  0x46   : > { %v521_v45 = vadd.f32 %v520_v40, %v519_v38  ;;  %v579_v55 = vrot.slane %v578_v51, 4  ;;  %v541_v40 = vadd.f32 %v540_v29, %v539_v18  ;;  %v655_v44 = vadd.f32 %v654_v35, %v653_v23 }
  0x47   : > { %v637_v47 = vadd.f32 %v636_v43, %v635_v39 }
  0x48   : > { %v522_v48 = vrot.slane %v521_v45, 2  ;;  %v580_v61 = vadd.f32 %v579_v55, %v578_v51 }
  0x49   : > { %v638_v52 = vrot.slane %v637_v47, 2 }
  0x4a   : > { %v523_v57 = vadd.f32 %v522_v48, %v521_v45  ;;  %v581_v4 = vrot.slane %v580_v61, 2 }
  0x4b   : > { %v639_v59 = vadd.f32 %v638_v52, %v637_v47  ;;  %v596_v47 = vadd.f32 %v595_v37, %v594_v27 }
  0x4c   : > { %v524_v62 = vrot.slane %v523_v57, 1  ;;  %v582_v11 = vadd.f32 %v581_v4, %v580_v61 }
  0x4d   : > { %v640_v0 = vrot.slane %v639_v59, 1 }
  0x4e   : > { %v525_v5 = vadd.f32 %v524_v62, %v523_v57  ;;  %v583_v14 = vrot.slane %v582_v11, 1 }
  0x4f   : > { %v641_v6 = vadd.f32 %v640_v0, %v639_v59  ;;  %v597_v59 = vrot.slane %v596_v47, 1  ;;  %v671_v0 = vld [vmem:[%s1217_s14 + $0x4] sm:$0x1] }
  0x50   : > { %959 = vlog2.f32 %v525_v5  ;;  %v584_v25 = vadd.f32 %v583_v14, %v582_v11  ;;  %v614_v14 = vld [vmem:[%s1217_s14 + $0x2] sm:$0x1] }
  0x51   : > { %961 = vlog2.f32 %v641_v6  ;;  %v598_v5 = vadd.f32 %v597_v59, %v596_v47 }
  0x52   : > { %963 = vlog2.f32 %v584_v25 }
  0x56   : > { %v960_v17 = vpop.eup %959 }
  0x57   : > { %v962_v19 = vpop.eup %961  ;;  %v527_v28 = vmul.f32 0.6931472, %v960_v17 }
  0x58   : > { %v643_v31 = vmul.f32 0.6931472, %v962_v19  ;;  %v964_v49 = vpop.eup %963 }
  0x59   : > { %v555_v41 = vadd.f32 %v527_v28, %v1234_v21  ;;  %v586_v58 = vmul.f32 0.6931472, %v964_v49 }
  0x5a   : > { %v669_v43 = vadd.f32 %v643_v31, %v1236_v24  ;;  %v675_v24 = vld [vmem:[%s1217_s14 + $0x5] sm:$0x1] }
  0x5b   : > { %v556_v52 = vsub.f32 %v555_v41, %v541_v40  ;;  %v612_v6 = vadd.f32 %v586_v58, %v1240_v32  ;;  %v618_v32 = vld [vmem:[%s1217_s14 + $0x3] sm:$0x1] }
  0x5c   : > { %v670_v56 = vsub.f32 %v669_v43, %v655_v44 }
  0x5d   : > { %v613_v8 = vsub.f32 %v612_v6, %v598_v5 }
  0x9b   : > { %v545_v20 = vpop.permute.xlu0 %544  ;;  %v659_v22 = vpop.permute.xlu1 %658 }
  0x9c   : > { %v547_v26 = vmul.f32 %v867_v50, %v545_v20  ;;  %v661_v16 = vmul.f32 %v869_v53, %v659_v22 }
  0x9e   : > { %v548_v30 = vsel %vm508_vm0, %v547_v26, 0.0  ;;  %v662_v33 = vsel %vm624_vm1, %v661_v16, 0.0 }
  0x9f   : > { %v549_v34 = vrot.slane %v548_v30, 4  ;;  %v663_v36 = vrot.slane %v662_v33, 4 }
  0xa1   : > { %v550_v38 = vadd.f32 %v549_v34, %v548_v30  ;;  %v664_v39 = vadd.f32 %v663_v36, %v662_v33 }
  0xa3   : > { %v551_v42 = vrot.slane %v550_v38, 2  ;;  %v665_v45 = vrot.slane %v664_v39, 2  ;;  %v602_v46 = vpop.permute.xlu0 %601 }
  0xa4   : > { %v604_v48 = vmul.f32 %v868_v2, %v602_v46 }
  0xa5   : > { %v552_v50 = vadd.f32 %v551_v42, %v550_v38  ;;  %v666_v51 = vadd.f32 %v665_v45, %v664_v39 }
  0xa6   : > { %v605_v53 = vsel %vm567_vm2, %v604_v48, 0.0 }
  0xa7   : > { %v553_v55 = vrot.slane %v552_v50, 1  ;;  %v667_v21 = vrot.slane %v666_v51, 1  ;;  %v606_v57 = vrot.slane %v605_v53, 4 }
  0xa9   : > { %v554_v60 = vadd.f32 %v553_v55, %v552_v50  ;;  %v668_v61 = vadd.f32 %v667_v21, %v666_v51  ;;  %v607_v62 = vadd.f32 %v606_v57, %v605_v53 }
  0xab   : > { %v558_v1 = vmul.f32 %v556_v52, %v554_v60  ;;  %v562_v2 = vadd.f32 %v561_v54, %v554_v60  ;;  %v672_v3 = vmul.f32 %v670_v56, %v668_v61  ;;  %v676_v4 = vadd.f32 %v675_v24, %v668_v61 }
  0xac   : > { %v608_v7 = vrot.slane %v607_v62, 2 }
  0xad   : > { %v559_v9 = vadd.f32 %v558_v1, %v557_v63  ;;  %563 = vst [vmem:[%s1217_s14 + $0x1] sm:$0x1] %v562_v2  ;;  %v673_v10 = vadd.f32 %v672_v3, %v671_v0 }
  0xae   : > { %677 = vst [vmem:[%s1217_s14 + $0x5] sm:$0x1] %v676_v4  ;;  %v609_v11 = vadd.f32 %v608_v7, %v607_v62 }
  0xaf   : > { %560 = vst [vmem:[%s1217_s14] sm:$0x1] %v559_v9 }
  0xb0   : > { %674 = vst [vmem:[%s1217_s14 + $0x4] sm:$0x1] %v673_v10  ;;  %v610_v12 = vrot.slane %v609_v11, 1 }
  0xb2   : > { %v611_v13 = vadd.f32 %v610_v12, %v609_v11 }
  0xb4   : > { %v615_v15 = vmul.f32 %v613_v8, %v611_v13  ;;  %v619_v17 = vadd.f32 %v618_v32, %v611_v13 }
  0xb6   : > { %v616_v18 = vadd.f32 %v615_v15, %v614_v14  ;;  %620 = vst [vmem:[%s1217_s14 + $0x3] sm:$0x1] %v619_v17 }
  0xb8   : > { %617 = vst [vmem:[%s1217_s14 + $0x2] sm:$0x1] %v616_v18 }
  0xb9   : > { %992 = shalt.err (!%p989_p8)
}
  0xba   : > { %874 = dma.vmem_to_hbm [thread:$0]  (%p1163_p3), %s692_s11, 128, %s694_s15, %s679_s25  }
  0xbb PF: > { %s1366_s14 = sld [smem:[#allocation9_spill]] }
  0xbc   : > { %s1367_s23 = sld [smem:[#allocation5_spill]] }
  0xc1   : > { %p880_p10 = scmp.ge.s32.totalorder %s1366_s14, 2 }
  0xc2   : > { %s705_s29 = sand.u32 1, %s1367_s23  }
  0xc3   : > { %p877_p11 = pnand %p880_p10, %p1173_p9  ;;  %s706_s19 = scalar_lea.sflag [#allocation3], %s705_s29 }
  0xc5   : > { %p878_p12 = pneg %p877_p11 }
  0xc7   : > { %1026 = dma.done.wait (%p878_p12), %s706_s19, 128  }
  0xc8   : > { %1028 = vsyncadd (%p878_p12), %s706_s19, 4294967168  ;;  %s22_s16 = sadd.s32 1, %s1366_s14   ;;  %s1369_s22 = sld [smem:[#allocation6_spill]] }
  0xc9   : > { %p19_p13 = scmp.ge.s32.totalorder %s22_s16, 6   ;;  %s1370_s11 = sld [smem:[#allocation14_spill]] }
  0xca   : > { %s1371_s12 = sld [smem:[#allocation7_spill]]  ;;  %s1375_s30 = smov %s1035_s10 }
  0xcb   : > { %s1372_s13 = sld [smem:[#allocation8_spill]]  ;;  %21 = sbr.rel (!%p19_p13) target bundleno = 7 (0x7), region = 110 }
  0xcc   : > { %s1373_s14 = sld [smem:[#allocation10_spill]] }
  0xcd   : > { %s1374_s15 = sld [smem:[#allocation12_spill]] }
  0xce   : > { %s1376_s10 = smov %s1369_s22 }
  0xd0   :  { %712 = vsyncpa [#allocation3], 1 }
  0xd1   :  { %714 = vsyncpa [#allocation3 + $0x1], 1 }

</bundles_post_ra>
